<compile_context>
chip_gen: v7x
topology: tpu7x:2x2x1
jax: 0.10.0
libtpu: 0.0.40
codegen_flags: <defaults>
</compile_context>

<pallas_src>
import functools

import numpy as np
import jax
import jax.numpy as jnp
from jax.experimental import pallas as pl
from jax.experimental.pallas import tpu as pltpu  # noqa: F401  (TPU backend assumed)


# --------------------------------------------------------------------------
# Fused sampling + soft-cross-entropy kernel.
# Layout: proposals on sublanes (N rows), classes on lanes (C columns).
# --------------------------------------------------------------------------
def _uploss_kernel(scores_ref, labels_ref, out_ref, *, num_classes, topk, alpha):
    s = scores_ref[...]                                   # (N, C) f32
    lab = labels_ref[...]                                 # (N, 1) i32
    n, c = s.shape

    cls = jax.lax.broadcasted_iota(jnp.int32, (n, c), 1)  # class id per lane
    fg = lab != (num_classes - 1)                         # (N, 1) bool
    fg_f = fg.astype(jnp.float32)                         # (N, 1)

    # ---- sampling metric ('min_score'): -max over columns != num_classes-2 ----
    drop_col = num_classes - 2
    masked = jnp.where(cls == drop_col, -jnp.inf, s)
    metric = -jnp.max(masked, axis=1, keepdims=True)      # (N, 1)

    # ---- group sizes and k = min(num_fg, num_bg[, topk]) ----------------------
    num_fg = jnp.sum(fg_f, axis=0, keepdims=True)         # (1, 1)
    num_bg = jnp.float32(n) - num_fg
    kk = jnp.minimum(num_fg, num_bg)
    if topk != -1:
        kk = jnp.minimum(kk, jnp.float32(topk))

    # ---- counting rank within each group (descending metric, low index wins) --
    rows = jax.lax.broadcasted_iota(jnp.int32, (n, n), 0)  # i (sublane)
    cols = jax.lax.broadcasted_iota(jnp.int32, (n, n), 1)  # j (lane)
    eye = rows == cols
    # Row-layout copies of metric / fg via diag-mask + sublane reduce (no transpose).
    metric_row = jnp.sum(jnp.where(eye, metric, 0.0), axis=0, keepdims=True)  # (1, N)
    fg_row = jnp.sum(jnp.where(eye, fg_f, 0.0), axis=0, keepdims=True)        # (1, N)

    same_grp = fg_row == fg_f                              # (N, N)
    beats = same_grp & ((metric_row > metric) |
                        ((metric_row == metric) & (cols < rows)))
    rank = jnp.sum(beats.astype(jnp.float32), axis=1, keepdims=True)  # (N, 1)

    sel = rank < kk                                        # (N, 1)
    num_sample = 2.0 * kk
    inv_ns = jnp.where(kk > 0.5, 1.0 / jnp.maximum(num_sample, 1.0), 0.0)
    w = jnp.where(sel, inv_ns, 0.0)                        # (N, 1), 1/num_sample folded in

    # ---- soft cross-entropy on label-excluded columns --------------------------
    onehot = cls == lab                                    # (N, C)
    m_full = jnp.max(s, axis=1, keepdims=True)             # (N, 1)
    e = jnp.exp(s - m_full)                                # (N, C)  single exp pass
    e_lab = jnp.sum(jnp.where(onehot, e, 0.0), axis=1, keepdims=True)
    sum_ex = jnp.sum(jnp.where(onehot, 0.0, e), axis=1, keepdims=True)  # masked sum
    sum_full = sum_ex + e_lab

    inv_full = pl.reciprocal(sum_full, approx=True)        # EUP slot
    gt = jnp.maximum(e_lab * inv_full, 0.0)                # torch clamps gt < 0 only
    one_minus_gt = sum_ex * inv_full                       # direct, no cancellation

    # logsumexp of scores with the label column removed; tiny floor only guards the
    # pathological all-other-logits-underflow case (target is ~0 there anyway).
    lse_ex = m_full + jnp.log(jnp.maximum(sum_ex, jnp.finfo(jnp.float32).tiny))

    # The single non-zero target column of mask_scores maps back to original
    # column num_classes-1 (fg rows) / num_classes (bg rows).
    tgt_col = jnp.where(fg, num_classes - 1, num_classes)  # (N, 1) i32
    s_tgt = jnp.sum(jnp.where(cls == tgt_col, s, 0.0), axis=1, keepdims=True)

    if alpha == 1.0:
        pow_term = one_minus_gt
    elif float(alpha).is_integer() and 0 <= int(alpha) <= 8:
        pow_term = jnp.ones_like(one_minus_gt)
        for _ in range(int(alpha)):                        # unrolled at trace time
            pow_term = pow_term * one_minus_gt
    else:
        pow_term = jnp.power(one_minus_gt, jnp.float32(alpha))
    t = gt * pow_term                                      # target value

    per_row = w * t * (s_tgt - lse_ex)                     # (N, 1)
    out_ref[...] = -jnp.sum(per_row, axis=0, keepdims=True)  # (1, 1)


# --------------------------------------------------------------------------
# Forward pass of UPLoss (sampling_metric='min_score'), single pallas_call.
# --------------------------------------------------------------------------
@functools.partial(jax.jit, static_argnames=("num_classes", "topk", "alpha"))
def up_loss(scores, labels, *, num_classes, topk=3, alpha=1.0):
    scores = scores.astype(jnp.float32)
    n, c = scores.shape
    assert c == num_classes + 1, "UPLoss expects C = num_classes + 1 columns"
    labels2 = labels.astype(jnp.int32).reshape(n, 1)

    out = pl.pallas_call(
        functools.partial(_uploss_kernel, num_classes=num_classes,
                          topk=topk, alpha=alpha),
        out_shape=jax.ShapeDtypeStruct((1, 1), jnp.float32),
        in_specs=[pl.BlockSpec((n, c), lambda: (0, 0)),
                  pl.BlockSpec((n, 1), lambda: (0, 0))],
        out_specs=pl.BlockSpec((1, 1), lambda: (0, 0)),
    )(scores, labels2)
    return out[0, 0]


# --------------------------------------------------------------------------
# Pure-numpy reference (direct translation of the torch forward)
# --------------------------------------------------------------------------
def _np_softmax(x):
    m = x.max(axis=1, keepdims=True)
    e = np.exp(x - m)
    return e / e.sum(axis=1, keepdims=True)


def _np_logsumexp(x):
    m = x.max(axis=1, keepdims=True)
    return m + np.log(np.exp(x - m).sum(axis=1, keepdims=True))


def uploss_reference(scores, labels, num_classes, topk=3, alpha=1.0):
    scores = np.asarray(scores, np.float64)
    labels = np.asarray(labels)
    fg_inds = labels != num_classes - 1
    fg_scores, fg_labels = scores[fg_inds], labels[fg_inds]
    bg_scores, bg_labels = scores[~fg_inds], labels[~fg_inds]
    _fg = np.concatenate([fg_scores[:, :num_classes - 2], fg_scores[:, -2:]], 1)
    _bg = np.concatenate([bg_scores[:, :num_classes - 2], bg_scores[:, -2:]], 1)
    num_fg = fg_scores.shape[0]
    k = num_fg if (topk == -1 or num_fg < topk) else topk
    num_bg = bg_scores.shape[0]
    if num_bg < k:
        k = num_bg
    pos_metric = -_fg.max(axis=1)
    neg_metric = -_bg.max(axis=1)
    pos_inds = np.argsort(-pos_metric, kind="stable")[:k]
    neg_inds = np.argsort(-neg_metric, kind="stable")[:k]
    fg_scores, fg_labels = fg_scores[pos_inds], fg_labels[pos_inds]
    bg_scores, bg_labels = bg_scores[neg_inds], bg_labels[neg_inds]
    s = np.concatenate([fg_scores, bg_scores], axis=0)
    l = np.concatenate([fg_labels, bg_labels], axis=0)
    ns, c = s.shape
    if ns == 0:
        return 0.0
    mask = np.tile(np.arange(c), (ns, 1))
    inds = mask != l[:, None]
    mask = mask[inds].reshape(ns, c - 1)
    gt = _np_softmax(s)[np.arange(ns), l]
    mask_scores = np.take_along_axis(s, mask, axis=1)
    gt = np.maximum(gt, 0.0)
    targets = np.zeros_like(mask_scores)
    nf = fg_scores.shape[0]
    targets[:nf, num_classes - 2] = gt[:nf] * (1 - gt[:nf]) ** alpha
    targets[nf:, num_classes - 1] = gt[nf:] * (1 - gt[nf:]) ** alpha
    logprobs = mask_scores - _np_logsumexp(mask_scores)
    return float(-(targets * logprobs).sum() / ns)


# --------------------------------------------------------------------------
if __name__ == "__main__":
    N, NUM_CLASSES = 64, 8
    C = NUM_CLASSES + 1

    key = jax.random.PRNGKey(0)
    k1, k2 = jax.random.split(key)
    scores = jax.random.normal(k1, (N, C), dtype=jnp.float32)
    rand_fg = jax.random.randint(k2, (N,), 0, NUM_CLASSES - 1)
    # every 4th proposal is background (label = NUM_CLASSES - 1)
    labels = jnp.where(jnp.arange(N) % 4 == 0, NUM_CLASSES - 1, rand_fg)
    labels = labels.astype(jnp.int32)

    loss = up_loss(scores, labels, num_classes=NUM_CLASSES, topk=3, alpha=1.0)
    loss = jax.block_until_ready(loss)

    ref = uploss_reference(np.asarray(scores), np.asarray(labels),
                           NUM_CLASSES, topk=3, alpha=1.0)
    # f32 kernel + approx reciprocal vs float64 reference
    assert abs(float(loss) - ref) < 5e-3 * max(1.0, abs(ref)), (float(loss), ref)
    print("KERNEL_OK")
</pallas_src>

<mosaic_0001>
module attributes {stable_mosaic.version = 11 : i64} {
  func.func @_uploss_kernel(%arg0: memref<64x9xf32, #tpu.memory_space<vmem>>, %arg1: memref<64x1xi32, #tpu.memory_space<vmem>>, %arg2: memref<1x1xf32, #tpu.memory_space<vmem>>) attributes {dimension_semantics = [], scalar_prefetch = 0 : i64, scratch_operands = 0 : i64, tpu.core_type = #tpu.core_type<tc>} {
    %c0 = arith.constant 0 : index
    %c0_0 = arith.constant 0 : index
    %0 = vector.load %arg0[%c0, %c0_0] : memref<64x9xf32, #tpu.memory_space<vmem>>, vector<64x9xf32>
    %c0_1 = arith.constant 0 : index
    %c0_2 = arith.constant 0 : index
    %1 = vector.load %arg1[%c0_1, %c0_2] : memref<64x1xi32, #tpu.memory_space<vmem>>, vector<64x1xi32>
    %2 = tpu.iota {dimensions = array<i32: 1>} : vector<64x9xi32>
    %c7_i32 = arith.constant 7 : i32
    %3 = vector.broadcast %c7_i32 : i32 to vector<64x1xi32>
    %4 = arith.cmpi ne, %1, %3 : vector<64x1xi32>
    %5 = arith.extui %4 : vector<64x1xi1> to vector<64x1xi32>
    %6 = arith.sitofp %5 : vector<64x1xi32> to vector<64x1xf32>
    %c6_i32 = arith.constant 6 : i32
    %7 = vector.broadcast %c6_i32 : i32 to vector<64x9xi32>
    %8 = arith.cmpi eq, %2, %7 : vector<64x9xi32>
    %cst = arith.constant 0xFF800000 : f32
    %9 = vector.broadcast %cst : f32 to vector<64x9xf32>
    %10 = arith.select %8, %9, %0 : vector<64x9xi1>, vector<64x9xf32>
    %cst_3 = arith.constant dense<0xFF800000> : vector<64xf32>
    %11 = vector.multi_reduction <maximumf>, %10, %cst_3 [1] : vector<64x9xf32> to vector<64xf32>
    %12 = vector.shape_cast %11 : vector<64xf32> to vector<64x1xf32>
    %cst_4 = arith.constant 0.000000e+00 : f32
    %13 = vector.broadcast %cst_4 : f32 to vector<64x1xf32>
    %14 = arith.subf %13, %12 : vector<64x1xf32>
    %cst_5 = arith.constant dense<0.000000e+00> : vector<1xf32>
    %15 = vector.multi_reduction <add>, %6, %cst_5 [0] : vector<64x1xf32> to vector<1xf32>
    %16 = vector.shape_cast %15 : vector<1xf32> to vector<1x1xf32>
    %cst_6 = arith.constant 6.400000e+01 : f32
    %17 = vector.broadcast %cst_6 : f32 to vector<1x1xf32>
    %18 = arith.subf %17, %16 : vector<1x1xf32>
    %19 = arith.minimumf %16, %18 : vector<1x1xf32>
    %cst_7 = arith.constant 3.000000e+00 : f32
    %20 = vector.broadcast %cst_7 : f32 to vector<1x1xf32>
    %21 = arith.minimumf %19, %20 : vector<1x1xf32>
    %22 = tpu.iota {dimensions = array<i32: 0>} : vector<64x64xi32>
    %23 = tpu.iota {dimensions = array<i32: 1>} : vector<64x64xi32>
    %24 = arith.cmpi eq, %22, %23 : vector<64x64xi32>
    %cst_8 = arith.constant 0.000000e+00 : f32
    %25 = vector.shape_cast %14 : vector<64x1xf32> to vector<64x1xf32>
    %26 = vector.broadcast %25 : vector<64x1xf32> to vector<64x64xf32>
    %27 = vector.broadcast %cst_8 : f32 to vector<64x64xf32>
    %28 = arith.select %24, %26, %27 : vector<64x64xi1>, vector<64x64xf32>
    %cst_9 = arith.constant dense<0.000000e+00> : vector<64xf32>
    %29 = vector.multi_reduction <add>, %28, %cst_9 [0] : vector<64x64xf32> to vector<64xf32>
    %30 = vector.shape_cast %29 : vector<64xf32> to vector<1x64xf32>
    %cst_10 = arith.constant 0.000000e+00 : f32
    %31 = vector.shape_cast %6 : vector<64x1xf32> to vector<64x1xf32>
    %32 = vector.broadcast %31 : vector<64x1xf32> to vector<64x64xf32>
    %33 = vector.broadcast %cst_10 : f32 to vector<64x64xf32>
    %34 = arith.select %24, %32, %33 : vector<64x64xi1>, vector<64x64xf32>
    %cst_11 = arith.constant dense<0.000000e+00> : vector<64xf32>
    %35 = vector.multi_reduction <add>, %34, %cst_11 [0] : vector<64x64xf32> to vector<64xf32>
    %36 = vector.shape_cast %35 : vector<64xf32> to vector<1x64xf32>
    %37 = vector.broadcast %36 : vector<1x64xf32> to vector<64x64xf32>
    %38 = vector.broadcast %6 : vector<64x1xf32> to vector<64x64xf32>
    %39 = arith.cmpf oeq, %37, %38 : vector<64x64xf32>
    %40 = vector.broadcast %30 : vector<1x64xf32> to vector<64x64xf32>
    %41 = vector.broadcast %14 : vector<64x1xf32> to vector<64x64xf32>
    %42 = arith.cmpf ogt, %40, %41 : vector<64x64xf32>
    %43 = vector.broadcast %30 : vector<1x64xf32> to vector<64x64xf32>
    %44 = vector.broadcast %14 : vector<64x1xf32> to vector<64x64xf32>
    %45 = arith.cmpf oeq, %43, %44 : vector<64x64xf32>
    %46 = arith.cmpi slt, %23, %22 : vector<64x64xi32>
    %47 = arith.andi %45, %46 : vector<64x64xi1>
    %48 = arith.ori %42, %47 : vector<64x64xi1>
    %49 = arith.andi %39, %48 : vector<64x64xi1>
    %50 = arith.extui %49 : vector<64x64xi1> to vector<64x64xi32>
    %51 = arith.sitofp %50 : vector<64x64xi32> to vector<64x64xf32>
    %cst_12 = arith.constant dense<0.000000e+00> : vector<64xf32>
    %52 = vector.multi_reduction <add>, %51, %cst_12 [1] : vector<64x64xf32> to vector<64xf32>
    %53 = vector.shape_cast %52 : vector<64xf32> to vector<64x1xf32>
    %54 = vector.broadcast %21 : vector<1x1xf32> to vector<64x1xf32>
    %55 = arith.cmpf olt, %53, %54 : vector<64x1xf32>
    %cst_13 = arith.constant 2.000000e+00 : f32
    %56 = vector.broadcast %cst_13 : f32 to vector<1x1xf32>
    %57 = arith.mulf %56, %21 : vector<1x1xf32>
    %cst_14 = arith.constant 5.000000e-01 : f32
    %58 = vector.broadcast %cst_14 : f32 to vector<1x1xf32>
    %59 = arith.cmpf ogt, %21, %58 : vector<1x1xf32>
    %cst_15 = arith.constant 1.000000e+00 : f32
    %60 = vector.broadcast %cst_15 : f32 to vector<1x1xf32>
    %61 = arith.maximumf %57, %60 : vector<1x1xf32>
    %cst_16 = arith.constant 1.000000e+00 : f32
    %62 = vector.broadcast %cst_16 : f32 to vector<1x1xf32>
    %63 = arith.divf %62, %61 : vector<1x1xf32>
    %cst_17 = arith.constant 0.000000e+00 : f32
    %64 = vector.broadcast %cst_17 : f32 to vector<1x1xf32>
    %65 = arith.select %59, %63, %64 : vector<1x1xi1>, vector<1x1xf32>
    %cst_18 = arith.constant 0.000000e+00 : f32
    %66 = vector.shape_cast %65 : vector<1x1xf32> to vector<1x1xf32>
    %67 = vector.broadcast %66 : vector<1x1xf32> to vector<64x1xf32>
    %68 = vector.broadcast %cst_18 : f32 to vector<64x1xf32>
    %69 = arith.select %55, %67, %68 : vector<64x1xi1>, vector<64x1xf32>
    %70 = vector.broadcast %1 : vector<64x1xi32> to vector<64x9xi32>
    %71 = arith.cmpi eq, %2, %70 : vector<64x9xi32>
    %cst_19 = arith.constant dense<0xFF800000> : vector<64xf32>
    %72 = vector.multi_reduction <maximumf>, %0, %cst_19 [1] : vector<64x9xf32> to vector<64xf32>
    %73 = vector.shape_cast %72 : vector<64xf32> to vector<64x1xf32>
    %74 = vector.broadcast %73 : vector<64x1xf32> to vector<64x9xf32>
    %75 = arith.subf %0, %74 : vector<64x9xf32>
    %76 = math.exp %75 : vector<64x9xf32>
    %cst_20 = arith.constant 0.000000e+00 : f32
    %77 = vector.broadcast %cst_20 : f32 to vector<64x9xf32>
    %78 = arith.select %71, %76, %77 : vector<64x9xi1>, vector<64x9xf32>
    %cst_21 = arith.constant dense<0.000000e+00> : vector<64xf32>
    %79 = vector.multi_reduction <add>, %78, %cst_21 [1] : vector<64x9xf32> to vector<64xf32>
    %80 = vector.shape_cast %79 : vector<64xf32> to vector<64x1xf32>
    %cst_22 = arith.constant 0.000000e+00 : f32
    %81 = vector.broadcast %cst_22 : f32 to vector<64x9xf32>
    %82 = arith.select %71, %81, %76 : vector<64x9xi1>, vector<64x9xf32>
    %cst_23 = arith.constant dense<0.000000e+00> : vector<64xf32>
    %83 = vector.multi_reduction <add>, %82, %cst_23 [1] : vector<64x9xf32> to vector<64xf32>
    %84 = vector.shape_cast %83 : vector<64xf32> to vector<64x1xf32>
    %85 = arith.addf %84, %80 : vector<64x1xf32>
    %86 = tpu.reciprocal %85 {approx = true} : vector<64x1xf32> -> vector<64x1xf32>
    %87 = arith.mulf %80, %86 : vector<64x1xf32>
    %cst_24 = arith.constant 0.000000e+00 : f32
    %88 = vector.broadcast %cst_24 : f32 to vector<64x1xf32>
    %89 = arith.maximumf %87, %88 : vector<64x1xf32>
    %90 = arith.mulf %84, %86 : vector<64x1xf32>
    %cst_25 = arith.constant 1.17549435E-38 : f32
    %91 = vector.broadcast %cst_25 : f32 to vector<64x1xf32>
    %92 = arith.maximumf %84, %91 : vector<64x1xf32>
    %93 = math.log %92 : vector<64x1xf32>
    %94 = arith.addf %73, %93 : vector<64x1xf32>
    %c7_i32_26 = arith.constant 7 : i32
    %c8_i32 = arith.constant 8 : i32
    %95 = vector.broadcast %c7_i32_26 : i32 to vector<64x1xi32>
    %96 = vector.broadcast %c8_i32 : i32 to vector<64x1xi32>
    %97 = arith.select %4, %95, %96 : vector<64x1xi1>, vector<64x1xi32>
    %98 = vector.broadcast %97 : vector<64x1xi32> to vector<64x9xi32>
    %99 = arith.cmpi eq, %2, %98 : vector<64x9xi32>
    %cst_27 = arith.constant 0.000000e+00 : f32
    %100 = vector.broadcast %cst_27 : f32 to vector<64x9xf32>
    %101 = arith.select %99, %0, %100 : vector<64x9xi1>, vector<64x9xf32>
    %cst_28 = arith.constant dense<0.000000e+00> : vector<64xf32>
    %102 = vector.multi_reduction <add>, %101, %cst_28 [1] : vector<64x9xf32> to vector<64xf32>
    %103 = vector.shape_cast %102 : vector<64xf32> to vector<64x1xf32>
    %104 = arith.mulf %89, %90 : vector<64x1xf32>
    %105 = arith.mulf %69, %104 : vector<64x1xf32>
    %106 = arith.subf %103, %94 : vector<64x1xf32>
    %107 = arith.mulf %105, %106 : vector<64x1xf32>
    %cst_29 = arith.constant dense<0.000000e+00> : vector<1xf32>
    %108 = vector.multi_reduction <add>, %107, %cst_29 [0] : vector<64x1xf32> to vector<1xf32>
    %109 = vector.shape_cast %108 : vector<1xf32> to vector<1x1xf32>
    %cst_30 = arith.constant 0.000000e+00 : f32
    %110 = vector.broadcast %cst_30 : f32 to vector<1x1xf32>
    %111 = arith.subf %110, %109 : vector<1x1xf32>
    %c0_31 = arith.constant 0 : index
    %c0_32 = arith.constant 0 : index
    %112 = vector.load %arg2[%c0_31, %c0_32] : memref<1x1xf32, #tpu.memory_space<vmem>>, vector<1x1xf32>
    tpu.vector_store %arg2[%c0_31, %c0_32], %111 {strides = array<i32>} : memref<1x1xf32, #tpu.memory_space<vmem>>, vector<1x1xf32>,
    return
  }
}

</mosaic_0001>

<bundles_post_ra>
// kernel: up_loss.1
= control target key start
LH: loop header
LB: loop body
LE: loop exit
PB: predicated region body
PF: predicated region fallthrough
CT: control target
= control target key end

     0   :  { %v28_v0 = vlaneseq  ;;  %v829_v2 = vmov 0   ;;  %vm63_vm0 = vcmask 72704   ;;  %vm1641_vm4 = vcmask 7168   ;;  %s1636_s0 = inlined_call_operand.vmem [shape: f32[64,9], index: 0, kind: input, shape index: {}]   ;;  %s1637_s1 = inlined_call_operand.vmem [shape: s32[64,1], index: 1, kind: input, shape index: {}]   ;;  %s1638_s2 = inlined_call_operand.hbm [shape: f32[1,1], index: 2, kind: output, shape index: {}]  }
   0x1   :  { %v851_v1 = vld [vmem:[%s1636_s0 + $0x10] sm:$0xff]  ;;  %749 = vset.pattern.permute.xlu0 %v829_v2  ;;  %733 = vset.pattern.permute.xlu1 %v829_v2  ;;  %v859_v4 = vld [vmem:[%s1636_s0] sm:$0xff]  ;;  %v864_v5 = vld [vmem:[%s1636_s0 + $0x18] sm:$0xff] }
   0x2   :  { %v854_v3 = vand.u32 127, %v28_v0  ;;  %v869_v6 = vld [vmem:[%s1636_s0 + $0x8] sm:$0xff]  ;;  %v874_v7 = vld [vmem:[%s1637_s1] sm:$0xff]  ;;  %v885_v9 = vld [vmem:[%s1637_s1 + $0x10] sm:$0xff] }
   0x3   :  { %v879_v8 = vld [vmem:[%s1637_s1 + $0x8] sm:$0xff]  ;;  %v909_v17 = vld [vmem:[%s1636_s0 + $0x20] sm:$0xff]  ;;  %vm30_vm2 = vcmp.ne.s32.totalorder %v874_v7, 7  ;;  %v916_v18 = vld [vmem:[%s1637_s1 + $0x18] sm:$0xff]  ;;  %vm32_vm5 = vcmp.ne.s32.totalorder %v885_v9, 7 }
   0x4   :  { %vm54_vm1 = vcmp.eq.s32.totalorder %v854_v3, 6  ;;  %v902_v14 = vld [vmem:[%s1636_s0 + $0x28] sm:$0xff]  ;;  %vm31_vm3 = vcmp.ne.s32.totalorder %v879_v8, 7 }
   0x5   :  { %v57_v10 = vsel %vm54_vm1, -inf, %v851_v1  ;;  %v55_v11 = vsel %vm54_vm1, -inf, %v859_v4  ;;  %v58_v12 = vsel %vm54_vm1, -inf, %v864_v5  ;;  %v56_v13 = vsel %vm54_vm1, -inf, %v869_v6 }
   0x6   :  { %v70_v15 = vsel %vm63_vm0, %v57_v10, -inf  ;;  %v64_v16 = vsel %vm63_vm0, %v55_v11, -inf }
   0x7   :  { %71 = vmax.xlane.f32.xlu1 %v70_v15  ;;  %65 = vmax.xlane.f32.xlu0 %v64_v16 }
   0x8   :  { %7 = vsyncpa [#allocation3], 0  ;;  %v73_v19 = vsel %vm63_vm0, %v58_v12, -inf  ;;  %v67_v20 = vsel %vm63_vm0, %v56_v13, -inf  ;;  %v60_v21 = vsel %vm54_vm1, -inf, %v902_v14  ;;  %v59_v22 = vsel %vm54_vm1, -inf, %v909_v17 }
   0x9   :  { %v830_v23 = vmov 0.0   ;;  %vm33_vm6 = vcmp.ne.s32.totalorder %v916_v18, 7  ;;  %v941_v26 = vld [vmem:[%s1637_s1 + $0x20] sm:$0xff]  ;;  %v946_v27 = vld [vmem:[%s1637_s1 + $0x28] sm:$0xff]  ;;  %v951_v28 = vld [vmem:[%s1636_s0 + $0x38] sm:$0xff]  ;;  %v79_v33 = vsel %vm63_vm0, %v60_v21, -inf }
   0xa   :  { %v930_v24 = vsel %vm30_vm2, 1.0, %v830_v23  ;;  %v935_v25 = vsel %vm31_vm3, 1.0, %v830_v23  ;;  %v956_v29 = vld [vmem:[%s1636_s0 + $0x30] sm:$0xff]  ;;  %v715_v32 = vsel %vm32_vm5, 1.0, %v830_v23  ;;  %v716_v35 = vsel %vm33_vm6, 1.0, %v830_v23  ;;  %v991_v44 = vld [vmem:[%s1637_s1 + $0x38] sm:$0xff] }
   0xb   :  { %v98_v30 = vsel %vm1641_vm4, %v935_v25, 0.0  ;;  %v97_v31 = vsel %vm1641_vm4, %v930_v24, 0.0  ;;  %74 = vmax.xlane.f32.xlu1 %v73_v19  ;;  %68 = vmax.xlane.f32.xlu0 %v67_v20  ;;  %v100_v36 = vsel %vm1641_vm4, %v715_v32, 0.0  ;;  %v973_v37 = vld [vmem:[%s1637_s1 + $0x30] sm:$0xff]  ;;  %v76_v38 = vsel %vm63_vm0, %v59_v22, -inf  ;;  %s832_s1 = smov [#allocation2]  }
   0xc   :  { %v99_v34 = vadd.f32 %v98_v30, %v97_v31  ;;  %v102_v39 = vsel %vm1641_vm4, %v716_v35, 0.0  ;;  %vm34_vm7 = vcmp.ne.s32.totalorder %v941_v26, 7  ;;  %vm35_vm8 = vcmp.ne.s32.totalorder %v946_v27, 7  ;;  %s705_s12 = sshll.u32 %s832_s1, 4  ;;  %s706_s12 = int_to_ptr.vmem [resolvable:$true] %s705_s12 }
   0xd   :  { %v62_v40 = vsel %vm54_vm1, -inf, %v951_v28  ;;  %v61_v41 = vsel %vm54_vm1, -inf, %v956_v29  ;;  %v717_v43 = vsel %vm34_vm7, 1.0, %v830_v23  ;;  %vm36_vm9 = vcmp.ne.s32.totalorder %v973_v37, 7  ;;  %s805_s13 = scalar_lea.vmem %s706_s12, 16  ;;  %s809_s14 = scalar_lea.vmem %s706_s12, 32 }
   0xe   :  { %v101_v42 = vadd.f32 %v100_v36, %v99_v34  ;;  %v104_v45 = vsel %vm1641_vm4, %v717_v43, 0.0  ;;  %v718_v47 = vsel %vm35_vm8, 1.0, %v830_v23  ;;  %v85_v48 = vsel %vm63_vm0, %v62_v40, -inf  ;;  %p806_p0 = scmp.ne.s32.totalorder %s706_s12, %s805_s13  ;;  %p810_p1 = scmp.lt.s32.totalorder %s706_s12, %s706_s12 }
   0xf   :  { %80 = vmax.xlane.f32.xlu1 %v79_v33  ;;  %77 = vmax.xlane.f32.xlu0 %v76_v38  ;;  %v82_v49 = vsel %vm63_vm0, %v61_v41, -inf  ;;  %v106_v50 = vsel %vm1641_vm4, %v718_v47, 0.0  ;;  %vm37_vm10 = vcmp.ne.s32.totalorder %v991_v44, 7  ;;  %v719_v52 = vsel %vm36_vm9, 1.0, %v830_v23  ;;  %p811_p2 = scmp.lt.s32.totalorder %s809_s14, %s805_s13 }
  0x10   :  { %v103_v46 = vadd.f32 %v102_v39, %v101_v42  ;;  %v108_v53 = vsel %vm1641_vm4, %v719_v52, 0.0  ;;  %v720_v55 = vsel %vm37_vm10, 1.0, %v830_v23  ;;  %v390_v56 = vsel %vm63_vm0, %v869_v6, -inf }
  0x11   :  { %v387_v57 = vsel %vm63_vm0, %v859_v4, -inf  ;;  %v110_v58 = vsel %vm1641_vm4, %v720_v55, 0.0  ;;  %v393_v61 = vsel %vm63_vm0, %v851_v1, -inf  ;;  %v402_v62 = vsel %vm63_vm0, %v902_v14, -inf  ;;  %p812_p3 = por %p811_p2, %p810_p1 }
  0x12   :  { %v105_v51 = vadd.f32 %v104_v45, %v103_v46  ;;  %v396_v63 = vsel %vm63_vm0, %v864_v5, -inf  ;;  %v408_v2 = vsel %vm63_vm0, %v951_v28, -inf  ;;  %v399_v10 = vsel %vm63_vm0, %v909_v17, -inf }
  0x13   :  { %86 = vmax.xlane.f32.xlu1 %v85_v48  ;;  %83 = vmax.xlane.f32.xlu0 %v82_v49  ;;  %v405_v11 = vsel %vm63_vm0, %v956_v29, -inf  ;;  %v750_v12 = vpack.i.bf16 %v935_v25, %v930_v24  ;;  %v734_v13 = vpack.i.bf16 %v716_v35, %v715_v32  ;;  %v739_v15 = vpack.i.bf16 %v718_v47, %v717_v43  ;;  %p813_p4 = pnand %p812_p3, %p806_p0 }
  0x14   :  { %v107_v54 = vadd.f32 %v106_v50, %v105_v51  ;;  %v744_v16 = vpack.i.bf16 %v720_v55, %v719_v52  ;;  %v831_v19 = vmov 8   ;;  %v1055_v30 = vshrl.u32 %v28_v0, 7 }
  0x15   :  { %v571_v20 = vsel %vm30_vm2, 7, %v831_v19  ;;  %v573_v21 = vsel %vm32_vm5, 7, %v831_v19  ;;  %v575_v22 = vsel %vm34_vm7, 7, %v831_v19  ;;  %v577_v24 = vsel %vm36_vm9, 7, %v831_v19 }
  0x16   :  { %v109_v59 = vadd.f32 %v108_v53, %v107_v54  ;;  %v576_v25 = vsel %vm35_vm8, 7, %v831_v19  ;;  %vm130_vm11 = vcmp.eq.s32.totalorder %v1055_v30, %v854_v3  ;;  %v1077_v36 = vadd.s32 32, %v1055_v30 }
  0x17   :  { %391 = vmax.xlane.f32.xlu1 %v390_v56  ;;  %388 = vmax.xlane.f32.xlu0 %v387_v57  ;;  %v1090_v40 = vadd.s32 40, %v1055_v30  ;;  %vm1642_vm15 = vcmask 523264   ;;  %v1105_v47 = vadd.s32 48, %v1055_v30  ;;  %v1119_v53 = vadd.s32 56, %v1055_v30 }
  0x18   :  { %v1014_v60 = vadd.f32 %v110_v58, %v109_v59  ;;  %vm134_vm1 = vcmp.eq.s32.totalorder %v1077_v36, %v854_v3 }
  0x19   :  { %vm135_vm2 = vcmp.eq.s32.totalorder %v1090_v40, %v854_v3  ;;  %vm137_vm5 = vcmp.eq.s32.totalorder %v1119_v53, %v854_v3  ;;  %vm267_vm9 = vcmp.lt.s32.totalorder %v854_v3, %v1105_v47 }
  0x1b   :  { %394 = vmax.xlane.f32.xlu1 %v393_v61  ;;  %403 = vmax.xlane.f32.xlu0 %v402_v62 }
  0x1f   :  { %397 = vmax.xlane.f32.xlu1 %v396_v63  ;;  %409 = vmax.xlane.f32.xlu0 %v408_v2 }
  0x23   :  { %400 = vmax.xlane.f32.xlu1 %v399_v10 }
  0x27   :  { %406 = vmax.xlane.f32.xlu1 %v405_v11 }
  0x35   :  { %751 = vperm.xlu0 %749, %v750_v12  }
  0x38   :  { %735 = vperm.xlu1 %733, %v734_v13  }
  0x39   :  { %359 = vperm.xlu0 %749, %v879_v8   ;;  %v1058_v8 = vadd.s32 8, %v1055_v30 }
  0x3b   :  { %vm131_vm12 = vcmp.eq.s32.totalorder %v1058_v8, %v854_v3 }
  0x3c   :  { %740 = vperm.xlu1 %733, %v739_v15  }
  0x3d   :  { %368 = vperm.xlu0 %749, %v941_v26   ;;  %v578_v26 = vsel %vm37_vm10, 7, %v831_v19  ;;  %vm268_vm10 = vcmp.lt.s32.totalorder %v854_v3, %v1119_v53 }
  0x40   :  { %745 = vperm.xlu1 %733, %v744_v16  }
  0x41   :  { %374 = vperm.xlu0 %749, %v973_v37  }
  0x44   :  { %356 = vperm.xlu1 %733, %v874_v7   ;;  %v572_v7 = vsel %vm31_vm3, 7, %v831_v19  ;;  %vm136_vm3 = vcmp.eq.s32.totalorder %v1105_v47, %v854_v3 }
  0x45   :  { %580 = vperm.xlu0 %749, %v571_v20  }
  0x48   :  { %362 = vperm.xlu1 %733, %v885_v9   ;;  %v574_v9 = vsel %vm33_vm6, 7, %v831_v19 }
  0x49   :  { %586 = vperm.xlu0 %749, %v573_v21  }
  0x4c   :  { %365 = vperm.xlu1 %733, %v916_v18   ;;  %v1061_v18 = vadd.s32 16, %v1055_v30 }
  0x4d   :  { %592 = vperm.xlu0 %749, %v575_v22  }
  0x4e   :  { %vm132_vm13 = vcmp.eq.s32.totalorder %v1061_v18, %v854_v3 }
  0x50   :  { %371 = vperm.xlu1 %733, %v946_v27   ;;  %v1068_v27 = vadd.s32 24, %v1055_v30 }
  0x51   :  { %598 = vperm.xlu0 %749, %v577_v24  }
  0x52   :  { %vm133_vm14 = vcmp.eq.s32.totalorder %v1068_v27, %v854_v3 }
  0x54   :  { %377 = vperm.xlu1 %733, %v991_v44  }
  0x58   :  { %583 = vperm.xlu1 %733, %v572_v7  }
  0x5c   :  { %589 = vperm.xlu1 %733, %v574_v9  }
  0x60   :  { %595 = vperm.xlu1 %733, %v576_v25  }
  0x64   :  { %601 = vperm.xlu1 %733, %v578_v26  }
  0x94   :  { %v72_v31 = vpop.xlane.xlu1 %71  ;;  %v66_v32 = vpop.xlane.xlu0 %65 }
  0x95   :  { %v1063_v33 = vsub.f32 0.0, %v66_v32  ;;  %v1070_v34 = vsub.f32 0.0, %v72_v31 }
  0x97   :  { %v138_v39 = vsel %vm130_vm11, %v1063_v33, 0.0  ;;  %v140_v42 = vsel %vm132_vm13, %v1070_v34, 0.0 }
  0x98   :  { %v75_v0 = vpop.xlane.xlu1 %74  ;;  %v69_v35 = vpop.xlane.xlu0 %68  ;;  %v147_v45 = vsel %vm1642_vm15, %v138_v39, 0.0  ;;  %v150_v52 = vsel %vm1642_vm15, %v140_v42, 0.0 }
  0x99   :  { %v1079_v37 = vsub.f32 0.0, %v75_v0  ;;  %v1081_v38 = vsub.f32 0.0, %v69_v35 }
  0x9b   :  { %v139_v41 = vsel %vm131_vm12, %v1081_v38, 0.0  ;;  %v141_v51 = vsel %vm133_vm14, %v1079_v37, 0.0 }
  0x9c   :  { %v81_v43 = vpop.xlane.xlu1 %80  ;;  %v78_v44 = vpop.xlane.xlu0 %77  ;;  %v148_v46 = vsel %vm1642_vm15, %v139_v41, 0.0  ;;  %v152_v58 = vsel %vm1642_vm15, %v141_v51, 0.0 }
  0x9d   :  { %v1107_v48 = vsub.f32 0.0, %v81_v43  ;;  %v1109_v49 = vsub.f32 0.0, %v78_v44  ;;  %v149_v50 = vadd.f32 %v148_v46, %v147_v45 }
  0x9f   :  { %v151_v54 = vadd.f32 %v150_v52, %v149_v50  ;;  %v142_v55 = vsel %vm134_vm1, %v1109_v49, 0.0  ;;  %v143_v2 = vsel %vm135_vm2, %v1107_v48, 0.0 }
  0xa0   :  { %v87_v56 = vpop.xlane.xlu1 %86  ;;  %v84_v57 = vpop.xlane.xlu0 %83  ;;  %v154_v59 = vsel %vm1642_vm15, %v142_v55, 0.0  ;;  %v156_v15 = vsel %vm1642_vm15, %v143_v2, 0.0 }
  0xa1   :  { %v1129_v61 = vsub.f32 0.0, %v87_v56  ;;  %v1131_v62 = vsub.f32 0.0, %v84_v57  ;;  %v153_v63 = vadd.f32 %v152_v58, %v151_v54 }
  0xa3   :  { %v155_v10 = vadd.f32 %v154_v59, %v153_v63  ;;  %v144_v11 = vsel %vm136_vm3, %v1131_v62, 0.0  ;;  %v145_v20 = vsel %vm137_vm5, %v1129_v61, 0.0 }
  0xa4   :  { %v1143_v12 = vpop.xlane.xlu1 %391  ;;  %v1145_v13 = vpop.xlane.xlu0 %388  ;;  %v158_v16 = vsel %vm1642_vm15, %v144_v11, 0.0  ;;  %v160_v7 = vsel %vm1642_vm15, %v145_v20, 0.0 }
  0xa5   :  { %v157_v19 = vadd.f32 %v156_v15, %v155_v10  ;;  %v412_v22 = vsub.f32 %v869_v6, %v1143_v12  ;;  %v411_v41 = vsub.f32 %v859_v4, %v1145_v13 }
  0xa7   :  { %v159_v21 = vadd.f32 %v158_v16, %v157_v19  ;;  %v421_v31 = vmul.f32 1.442695, %v412_v22  ;;  %v419_v50 = vmul.f32 1.442695, %v411_v41 }
  0xa8   :  { %v1155_v24 = vpop.xlane.xlu1 %394  ;;  %v1158_v25 = vpop.xlane.xlu0 %403 }
  0xa9   :  { %v161_v9 = vadd.f32 %v160_v7, %v159_v21  ;;  %755 = vpow2.f32 %v421_v31  ;;  %v413_v51 = vsub.f32 %v851_v1, %v1155_v24 }
  0xaa   :  { %757 = vpow2.f32 %v419_v50 }
  0xab   :  { %v162_v26 = vrot.slane %v161_v9, 4  ;;  %v423_v15 = vmul.f32 1.442695, %v413_v51 }
  0xac   :  { %v1160_v32 = vpop.xlane.xlu1 %397  ;;  %v1162_v35 = vpop.xlane.xlu0 %409 }
  0xad   :  { %v163_v0 = vadd.f32 %v162_v26, %v161_v9  ;;  %759 = vpow2.f32 %v423_v15 }
  0xaf   :  { %v164_v42 = vrot.slane %v163_v0, 2 }
  0xb0   :  { %v1164_v39 = vpop.xlane.xlu1 %400 }
  0xb1   :  { %v165_v55 = vadd.f32 %v164_v42, %v163_v0 }
  0xb3   :  { %v1194_v11 = vpop.eup %755  ;;  %v166_v21 = vrot.slane %v165_v55, 1 }
  0xb4   :  { %v1168_v43 = vpop.xlane.xlu1 %406  ;;  %v1170_v44 = vpop.permute.xlu0 %751 }
  0xb5   :  { %v754_v45 = vunpack.i.h.bf16 %v1170_v44  ;;  %v753_v46 = vunpack.i.l.bf16 %v1170_v44 }
  0xb7   :  { %v209_v52 = vsel %vm131_vm12, %v754_v45, 0.0  ;;  %v208_v54 = vsel %vm130_vm11, %v753_v46, 0.0 }
  0xb8   :  { %v217_v56 = vsel %vm1642_vm15, %v209_v52, 0.0  ;;  %v216_v57 = vsel %vm1642_vm15, %v208_v54, 0.0  ;;  %v1188_v58 = vpop.permute.xlu1 %735  ;;  %v1190_v59 = vpop.permute.xlu0 %359  ;;  %v1229_v52 = vadd.f32 %v166_v21, %v165_v55 }
  0xb9   :  { %v218_v63 = vadd.f32 %v217_v56, %v216_v57  ;;  %v738_v2 = vunpack.i.h.bf16 %v1188_v58  ;;  %v737_v10 = vunpack.i.l.bf16 %v1188_v58  ;;  %vm380_vm6 = vcmp.eq.s32.totalorder %v854_v3, %v1190_v59 }
  0xba   :  { %v436_v20 = vsel %vm380_vm6, %v1194_v11, 0.0  ;;  %v414_v57 = vsub.f32 %v864_v5, %v1160_v32  ;;  %vm251_vm7 = vcmp.gt.f32.partialorder %v1229_v52, %v1131_v62  ;;  %vm259_vm11 = vcmp.eq.f32.partialorder %v1229_v52, %v1131_v62 }
  0xbb   :  { %v211_v16 = vsel %vm133_vm14, %v738_v2, 0.0  ;;  %v210_v19 = vsel %vm132_vm13, %v737_v10, 0.0  ;;  %v446_v9 = vsel %vm63_vm0, %v436_v20, 0.0  ;;  %vm252_vm12 = vcmp.gt.f32.partialorder %v1229_v52, %v1129_v61 }
  0xbc   :  { %v219_v22 = vsel %vm1642_vm15, %v210_v19, 0.0  ;;  %v1213_v7 = vpop.permute.xlu1 %740  ;;  %447 = vadd.xlane.f32.xlu1 %v446_v9  ;;  %v221_v41 = vsel %vm1642_vm15, %v211_v16, 0.0  ;;  %v415_v19 = vsub.f32 %v909_v17, %v1164_v39  ;;  %v758_v9 = vpop.eup %757  ;;  %vm260_vm13 = vcmp.eq.f32.partialorder %v1229_v52, %v1129_v61 }
  0xbd   :  { %v220_v26 = vadd.f32 %v219_v22, %v218_v63  ;;  %v1639_v31 = vunpack.i.h.bf16 %v1213_v7  ;;  %v1640_v0 = vunpack.i.l.bf16 %v1213_v7  ;;  %v468_v62 = vsel %vm380_vm6, 0.0, %v1194_v11 }
  0xbe   :  { %vm253_vm6 = vcmp.eq.f32.partialorder %v1229_v52, %v1063_v33  ;;  %v418_v59 = vsub.f32 %v951_v28, %v1162_v35 }
  0xbf   :  { %v222_v42 = vadd.f32 %v221_v41, %v220_v26  ;;  %v213_v50 = vsel %vm135_vm2, %v1639_v31, 0.0  ;;  %v212_v51 = vsel %vm134_vm1, %v1640_v0, 0.0  ;;  %v760_v0 = vpop.eup %759  ;;  %vm275_vm1 = vmand %vm259_vm11, %vm267_vm9  ;;  %vm245_vm9 = vcmp.gt.f32.partialorder %v1229_v52, %v1063_v33 }
  0xc0   :  { %v223_v54 = vsel %vm1642_vm15, %v212_v51, 0.0  ;;  %v1232_v56 = vpop.permute.xlu1 %745  ;;  %v225_v20 = vsel %vm1642_vm15, %v213_v50, 0.0  ;;  %v427_v51 = vmul.f32 1.442695, %v415_v19  ;;  %v416_v19 = vsub.f32 %v902_v14, %v1158_v25  ;;  %vm1278_vm2 = vmor %vm251_vm7, %vm275_vm1 }
  0xc1   :  { %v224_v63 = vadd.f32 %v223_v54, %v222_v42  ;;  %v748_v15 = vunpack.i.h.bf16 %v1232_v56  ;;  %v747_v16 = vunpack.i.l.bf16 %v1232_v56  ;;  %v425_v42 = vmul.f32 1.442695, %v414_v57 }
  0xc2   :  { %vm261_vm7 = vcmp.lt.s32.totalorder %v854_v3, %v1055_v30 }
  0xc3   :  { %v226_v22 = vadd.f32 %v225_v20, %v224_v63  ;;  %v215_v55 = vsel %vm137_vm5, %v748_v15, 0.0  ;;  %v214_v21 = vsel %vm136_vm3, %v747_v16, 0.0  ;;  %761 = vpow2.f32 %v425_v42  ;;  %vm276_vm3 = vmand %vm260_vm13, %vm268_vm10 }
  0xc4   :  { %v227_v26 = vsel %vm1642_vm15, %v214_v21, 0.0  ;;  %v357_v41 = vpop.permute.xlu1 %356  ;;  %v229_v54 = vsel %vm1642_vm15, %v215_v55, 0.0  ;;  %763 = vpow2.f32 %v427_v51  ;;  %vm1296_vm5 = vmor %vm252_vm12, %vm276_vm3  ;;  %v1646_v42 = vmov 0 }
  0xc5   :  { %v228_v50 = vadd.f32 %v227_v26, %v226_v22  ;;  %vm379_vm8 = vcmp.eq.s32.totalorder %v854_v3, %v357_v41  ;;  %v1647_v42 = vsel %vm1296_vm5, 4294967295, %v1646_v42  ;;  %vm269_vm10 = vmand %vm253_vm6, %vm261_vm7  ;;  %vm246_vm6 = vcmp.gt.f32.partialorder %v1229_v52, %v1081_v38 }
  0xc6   :  { %v435_v63 = vsel %vm379_vm8, %v758_v9, 0.0  ;;  %v467_v57 = vsel %vm379_vm8, 0.0, %v758_v9  ;;  %v417_v9 = vsub.f32 %v956_v29, %v1168_v43  ;;  %vm277_vm12 = vmor %vm245_vm9, %vm269_vm10  ;;  %vm255_vm9 = vcmp.eq.f32.partialorder %v1229_v52, %v1070_v34 }
  0xc7   :  { %v230_v20 = vadd.f32 %v229_v54, %v228_v50  ;;  %v443_v31 = vsel %vm63_vm0, %v435_v63, 0.0  ;;  %v475_v41 = vsel %vm63_vm0, %v467_v57, 0.0  ;;  %v429_v50 = vmul.f32 1.442695, %v416_v19 }
  0xc8   :  { %v363_v21 = vpop.permute.xlu1 %362  ;;  %444 = vadd.xlane.f32.xlu0 %v443_v31  ;;  %v431_v53 = vmul.f32 1.442695, %v417_v9  ;;  %vm263_vm10 = vcmp.lt.s32.totalorder %v854_v3, %v1061_v18 }
  0xc9   :  { %v231_v22 = vrot.slane %v230_v20, 4  ;;  %vm381_vm14 = vcmp.eq.s32.totalorder %v854_v3, %v363_v21  ;;  %765 = vpow2.f32 %v429_v50  ;;  %v369_v21 = vpop.permute.xlu0 %368 }
  0xca   :  { %v437_v31 = vsel %vm381_vm14, %v760_v0, 0.0  ;;  %v469_v61 = vsel %vm381_vm14, 0.0, %v760_v0  ;;  %767 = vpow2.f32 %v431_v53  ;;  %vm383_vm14 = vcmp.eq.s32.totalorder %v854_v3, %v369_v21 }
  0xcb   :  { %v232_v26 = vadd.f32 %v231_v22, %v230_v20  ;;  %v449_v47 = vsel %vm63_vm0, %v437_v31, 0.0  ;;  %v478_v20 = vsel %vm63_vm0, %v468_v62, 0.0  ;;  %v481_v19 = vsel %vm63_vm0, %v469_v61, 0.0 }
  0xcc   :  { %476 = vadd.xlane.f32.xlu0 %v475_v41  ;;  %450 = vadd.xlane.f32.xlu1 %v449_v47  ;;  %v366_v54 = vpop.permute.xlu1 %365  ;;  %v433_v31 = vmul.f32 1.442695, %v418_v59 }
  0xcd   :  { %v233_v51 = vrot.slane %v232_v26, 2  ;;  %vm382_vm8 = vcmp.eq.s32.totalorder %v854_v3, %v366_v54  ;;  %v762_v30 = vpop.eup %761  ;;  %v375_v53 = vpop.permute.xlu0 %374 }
  0xce   :  { %v764_v22 = vpop.eup %763  ;;  %v470_v0 = vsel %vm382_vm8, 0.0, %v762_v30  ;;  %769 = vpow2.f32 %v433_v31  ;;  %v438_v62 = vsel %vm382_vm8, %v762_v30, 0.0  ;;  %vm254_vm8 = vcmp.eq.f32.partialorder %v1229_v52, %v1081_v38 }
  0xcf   :  { %v234_v63 = vadd.f32 %v233_v51, %v232_v26  ;;  %v484_v9 = vsel %vm63_vm0, %v470_v0, 0.0  ;;  %v471_v47 = vsel %vm383_vm14, 0.0, %v764_v22 }
  0xd0   :  { %479 = vadd.xlane.f32.xlu0 %v478_v20  ;;  %v372_v33 = vpop.permute.xlu1 %371 }
  0xd1   :  { %v235_v11 = vrot.slane %v234_v63, 1  ;;  %vm384_vm3 = vcmp.eq.s32.totalorder %v854_v3, %v372_v33  ;;  %v581_v21 = vpop.permute.xlu0 %580 }
  0xd3   :  { %v1312_v57 = vadd.f32 %v235_v11, %v234_v63  ;;  %v766_v51 = vpop.eup %765  ;;  %v452_v63 = vsel %vm63_vm0, %v438_v62, 0.0 }
  0xd4   :  { %482 = vadd.xlane.f32.xlu0 %v481_v19  ;;  %v472_v20 = vsel %vm384_vm3, 0.0, %v766_v51  ;;  %v768_v56 = vpop.eup %767  ;;  %v378_v54 = vpop.permute.xlu1 %377  ;;  %v440_v30 = vsel %vm384_vm3, %v766_v51, 0.0  ;;  %vm262_vm3 = vcmp.lt.s32.totalorder %v854_v3, %v1058_v8 }
  0xd5   :  { %vm237_vm11 = vcmp.eq.f32.partialorder %v1312_v57, %v753_v46  ;;  %vm1329_vm1 = vcmp.eq.f32.partialorder %v1312_v57, %v748_v15  ;;  %vm1339_vm7 = vcmp.eq.f32.partialorder %v1312_v57, %v747_v16  ;;  %v487_v15 = vsel %vm63_vm0, %v471_v47, 0.0 }
  0xd6   :  { %vm285_vm13 = vmand %vm237_vm11, %vm277_vm12  ;;  %v439_v16 = vsel %vm383_vm14, %v764_v22, 0.0  ;;  %vm385_vm11 = vcmp.eq.s32.totalorder %v854_v3, %v375_v53  ;;  %v490_v61 = vsel %vm63_vm0, %v472_v20, 0.0  ;;  %vm386_vm12 = vcmp.eq.s32.totalorder %v854_v3, %v378_v54 }
  0xd7   :  { %v721_v26 = vsel %vm285_vm13, 1.0, %v830_v23  ;;  %v455_v59 = vsel %vm63_vm0, %v439_v16, 0.0  ;;  %v473_v11 = vsel %vm385_vm11, 0.0, %v768_v56  ;;  %vm247_vm13 = vcmp.gt.f32.partialorder %v1229_v52, %v1070_v34  ;;  %vm271_vm14 = vmand %vm255_vm9, %vm263_vm10 }
  0xd8   :  { %485 = vadd.xlane.f32.xlu0 %v484_v9  ;;  %v309_v41 = vsel %vm1642_vm15, %v721_v26, 0.0  ;;  %vm1374_vm4 = vcmp.eq.f32.partialorder %v1312_v57, %v737_v10  ;;  %v770_v19 = vpop.eup %769  ;;  %v493_v22 = vsel %vm63_vm0, %v473_v11, 0.0  ;;  %v458_v34 = vsel %vm63_vm0, %v440_v30, 0.0  ;;  %vm279_vm9 = vmor %vm247_vm13, %vm271_vm14  ;;  %v584_v31 = vpop.permute.xlu1 %583 }
  0xd9   :  { %310 = vadd.xlane.f32.xlu1 %v309_v41  ;;  %v474_v0 = vsel %vm386_vm12, 0.0, %v770_v19  ;;  %v441_v10 = vsel %vm385_vm11, %v768_v56, 0.0  ;;  %vm287_vm10 = vmand %vm1374_vm4, %vm279_vm9  ;;  %vm1396_vm5 = vcmp.eq.f32.partialorder %v1312_v57, %v754_v45  ;;  %vm604_vm4 = vcmp.eq.s32.totalorder %v854_v3, %v584_v31  ;;  %v587_v41 = vpop.permute.xlu0 %586 }
  0xda   :  { %vm270_vm15 = vmand %vm254_vm8, %vm262_vm3  ;;  %v496_v8 = vsel %vm63_vm0, %v474_v0, 0.0  ;;  %v461_v9 = vsel %vm63_vm0, %v441_v10, 0.0  ;;  %v723_v26 = vsel %vm287_vm10, 1.0, %v830_v23  ;;  %v442_v38 = vsel %vm386_vm12, %v770_v19, 0.0 }
  0xdb   :  { %vm278_vm8 = vmor %vm246_vm6, %vm270_vm15  ;;  %vm256_vm13 = vcmp.eq.f32.partialorder %v1229_v52, %v1079_v37  ;;  %vm264_vm14 = vcmp.lt.s32.totalorder %v854_v3, %v1068_v27  ;;  %vm1656_vm3 = vcmask 523264   ;;  %v464_v45 = vsel %vm63_vm0, %v442_v38, 0.0 }
  0xdc   :  { %488 = vadd.xlane.f32.xlu0 %v487_v15  ;;  %vm286_vm11 = vmand %vm1396_vm5, %vm278_vm8  ;;  %v315_v44 = vsel %vm1656_vm3, %v723_v26, 0.0  ;;  %v612_v47 = vsel %vm604_vm4, %v869_v6, 0.0  ;;  %vm605_vm12 = vcmp.eq.s32.totalorder %v854_v3, %v587_v41  ;;  %vm248_vm15 = vcmp.gt.f32.partialorder %v1229_v52, %v1079_v37  ;;  %v590_v51 = vpop.permute.xlu1 %589 }
  0xdd   :  { %453 = vadd.xlane.f32.xlu1 %v452_v63  ;;  %v722_v62 = vsel %vm286_vm11, 1.0, %v830_v23  ;;  %vm272_vm5 = vmand %vm256_vm13, %vm264_vm14  ;;  %vm603_vm6 = vcmp.eq.s32.totalorder %v854_v3, %v581_v21  ;;  %vm257_vm9 = vcmp.eq.f32.partialorder %v1229_v52, %v1109_v49  ;;  %vm265_vm10 = vcmp.lt.s32.totalorder %v854_v3, %v1077_v36  ;;  %v593_v58 = vpop.permute.xlu0 %592 }
  0xde   :  { %v622_v6 = vsel %vm63_vm0, %v612_v47, 0.0  ;;  %vm1427_vm4 = vcmp.eq.f32.partialorder %v1312_v57, %v738_v2  ;;  %vm1659_vm8 = vmmov %vm1656_vm3  ;;  %v613_v15 = vsel %vm605_vm12, %v851_v1, 0.0  ;;  %vm606_vm13 = vcmp.eq.s32.totalorder %v854_v3, %v590_v51 }
  0xdf   :  { %v312_v37 = vsel %vm1659_vm8, %v722_v62, 0.0  ;;  %vm1433_vm11 = vmor %vm248_vm15, %vm272_vm5  ;;  %v611_v36 = vsel %vm603_vm6, %v859_v4, 0.0  ;;  %vm249_vm14 = vcmp.gt.f32.partialorder %v1229_v52, %v1109_v49  ;;  %vm258_vm12 = vcmp.eq.f32.partialorder %v1229_v52, %v1107_v48 }
  0xe0   :  { %491 = vadd.xlane.f32.xlu0 %v490_v61  ;;  %vm273_vm3 = vmand %vm257_vm9, %vm265_vm10  ;;  %vm266_vm15 = vcmp.lt.s32.totalorder %v854_v3, %v1090_v40  ;;  %v625_v1 = vsel %vm63_vm0, %v613_v15, 0.0  ;;  %v1662_v4 = vunpack.i.l.bf16 %v1213_v7  ;;  %v619_v2 = vsel %vm63_vm0, %v611_v36, 0.0  ;;  %v596_v56 = vpop.permute.xlu1 %595 }
  0xe1   :  { %456 = vadd.xlane.f32.xlu1 %v455_v59  ;;  %vm288_vm8 = vmand %vm1427_vm4, %vm1433_vm11  ;;  %v614_v63 = vsel %vm606_vm13, %v864_v5, 0.0  ;;  %vm607_vm9 = vcmp.eq.s32.totalorder %v854_v3, %v593_v58  ;;  %vm250_vm11 = vcmp.gt.f32.partialorder %v1229_v52, %v1107_v48  ;;  %v1667_v16 = vunpack.i.h.bf16 %v1213_v7  ;;  %v599_v48 = vpop.permute.xlu0 %598 }
  0xe2   :  { %vm1453_vm5 = vcmp.eq.f32.partialorder %v1312_v57, %v1662_v4  ;;  %vm1459_vm6 = vmor %vm249_vm14, %vm273_vm3  ;;  %v724_v40 = vsel %vm288_vm8, 1.0, %v830_v23  ;;  %v628_v5 = vsel %vm63_vm0, %v614_v63, 0.0  ;;  %vm1670_vm14 = vcmask 523264  }
  0xe3   :  { %vm274_vm10 = vmand %vm258_vm12, %vm266_vm15  ;;  %vm1475_vm13 = vcmp.eq.f32.partialorder %v1312_v57, %v1667_v16  ;;  %v318_v61 = vsel %vm1670_vm14, %v724_v40, 0.0  ;;  %v615_v59 = vsel %vm607_vm9, %v909_v17, 0.0  ;;  %vm608_vm3 = vcmp.eq.s32.totalorder %v854_v3, %v596_v56 }
  0xe4   :  { %494 = vadd.xlane.f32.xlu0 %v493_v22  ;;  %vm289_vm4 = vmand %vm1453_vm5, %vm1459_vm6  ;;  %v631_v7 = vsel %vm63_vm0, %v615_v59, 0.0  ;;  %v616_v57 = vsel %vm608_vm3, %v902_v14, 0.0  ;;  %vm609_vm5 = vcmp.eq.s32.totalorder %v854_v3, %v599_v48  ;;  %v602_v22 = vpop.permute.xlu1 %601  ;;  %v112_v10 = vrot.slane %v1014_v60, 4 }
  0xe5   :  { %459 = vadd.xlane.f32.xlu1 %v458_v34  ;;  %v725_v11 = vsel %vm289_vm4, 1.0, %v830_v23  ;;  %vm282_vm8 = vmor %vm250_vm11, %vm274_vm10  ;;  %v634_v30 = vsel %vm63_vm0, %v616_v57, 0.0  ;;  %v617_v19 = vsel %vm609_vm5, %v956_v29, 0.0  ;;  %vm1675_vm4 = vnez %v1647_v42 }
  0xe6   :  { %vm290_vm12 = vmand %vm1475_vm13, %vm282_vm8  ;;  %v637_v21 = vsel %vm63_vm0, %v617_v19, 0.0  ;;  %vm610_vm13 = vcmp.eq.s32.totalorder %v854_v3, %v602_v22  ;;  %v113_v31 = vadd.f32 %v112_v10, %v1014_v60 }
  0xe7   :  { %vm1671_vm15 = vmmov %vm1670_vm14  ;;  %v726_v17 = vsel %vm290_vm12, 1.0, %v830_v23  ;;  %v618_v50 = vsel %vm610_vm13, %v951_v28, 0.0  ;;  %vm1678_vm12 = vcmask 7168  }
  0xe8   :  { %497 = vadd.xlane.f32.xlu0 %v496_v8  ;;  %v321_v52 = vsel %vm1671_vm15, %v725_v11, 0.0  ;;  %vm1672_vm6 = vmmov %vm1670_vm14  ;;  %v640_v0 = vsel %vm63_vm0, %v618_v50, 0.0  ;;  %v114_v8 = vrot.slane %v113_v31, 2 }
  0xe9   :  { %462 = vadd.xlane.f32.xlu1 %v461_v9  ;;  %v324_v18 = vsel %vm1672_vm6, %v726_v17, 0.0  ;;  %vm1673_vm9 = vmand %vm1339_vm7, %vm1278_vm2 }
  0xea   :  { %v727_v14 = vsel %vm1673_vm9, 1.0, %v830_v23  ;;  %vm1674_vm10 = vmmov %vm1672_vm6  ;;  %v115_v46 = vadd.f32 %v114_v8, %v113_v31 }
  0xeb   :  { %v327_v34 = vsel %vm1674_vm10, %v727_v14, 0.0  ;;  %vm1676_vm11 = vmand %vm1329_vm1, %vm1675_vm4 }
  0xec   :  { %316 = vadd.xlane.f32.xlu0 %v315_v44  ;;  %v728_v29 = vsel %vm1676_vm11, 1.0, %v830_v23  ;;  %vm1677_vm14 = vmmov %vm1672_vm6  ;;  %v116_v33 = vrot.slane %v115_v46, 1 }
  0xed   :  { %465 = vadd.xlane.f32.xlu1 %v464_v45  ;;  %v330_v55 = vsel %vm1677_vm14, %v728_v29, 0.0  ;;  %vm1679_vm5 = vmmov %vm1678_vm12 }
  0xee   :  { %v117_v9 = vadd.f32 %v116_v33, %v115_v46  ;;  %vm1680_vm9 = vmmov %vm1679_vm5 }
  0xef   :  { %vm1681_vm10 = vmmov %vm1679_vm5 }
  0xf0   :  { %623 = vadd.xlane.f32.xlu0 %v622_v6  ;;  %v118_v26 = vsub.f32 64.0, %v117_v9  ;;  %vm1682_vm4 = vmmov %vm1679_vm5 }
  0xf1   :  { %313 = vadd.xlane.f32.xlu1 %v312_v37  ;;  %vm1683_vm13 = vmmov %vm1682_vm4 }
  0xf2   :  { %v119_v41 = vmin.f32 %v117_v9, %v118_v26  ;;  %vm1684_vm14 = vmmov %vm1682_vm4 }
  0xf4   :  { %626 = vadd.xlane.f32.xlu0 %v625_v1  ;;  %v1519_v45 = vmin.f32 %v119_v41, 3.0 }
  0xf5   :  { %620 = vadd.xlane.f32.xlu1 %v619_v2 }
  0xf6   :  { %v341_v51 = vmul.f32 2.0, %v1519_v45  ;;  %vm342_vm0 = vcmp.gt.f32.partialorder %v1519_v45, 0.5 }
  0xf8   :  { %629 = vadd.xlane.f32.xlu0 %v628_v5  ;;  %v343_v15 = vmax.f32 %v341_v51, 1.0 }
  0xf9   :  { %319 = vadd.xlane.f32.xlu1 %v318_v61 }
  0xfc   :  { %632 = vadd.xlane.f32.xlu0 %v631_v7 }
  0xfd   :  { %322 = vadd.xlane.f32.xlu1 %v321_v52 }
 0x100   :  { %635 = vadd.xlane.f32.xlu0 %v634_v30 }
 0x101   :  { %325 = vadd.xlane.f32.xlu1 %v324_v18 }
 0x104   :  { %638 = vadd.xlane.f32.xlu0 %v637_v21 }
 0x105   :  { %328 = vadd.xlane.f32.xlu1 %v327_v34 }
 0x109   :  { %331 = vadd.xlane.f32.xlu1 %v330_v55 }
 0x10d   :  { %641 = vadd.xlane.f32.xlu1 %v640_v0 }
 0x149   :  { %v448_v38 = vpop.xlane.xlu1 %447 }
 0x155   :  { %v445_v42 = vpop.xlane.xlu0 %444 }
 0x159   :  { %v477_v23 = vpop.xlane.xlu0 %476  ;;  %v1517_v28 = vpop.xlane.xlu1 %450 }
 0x15a   :  { %v499_v62 = vadd.f32 %v477_v23, %v445_v42  ;;  %v539_v36 = vmax.f32 %v477_v23, 1.1754944e-38 }
 0x15c   :  { %771 = vrcp.f32 %v499_v62 }
 0x15d   :  { %v1513_v3 = vpop.xlane.xlu0 %479 }
 0x15e   :  { %v500_v37 = vadd.f32 %v1513_v3, %v448_v38  ;;  %v540_v4 = vmax.f32 %v1513_v3, 1.1754944e-38 }
 0x160   :  { %773 = vrcp.f32 %v500_v37 }
 0x161   :  { %v1515_v44 = vpop.xlane.xlu0 %482  ;;  %775 = vrcp.f32 %v343_v15 }
 0x162   :  { %v501_v1 = vadd.f32 %v1515_v44, %v1517_v28  ;;  %777 = vlog2.f32 %v539_v36  ;;  %v541_v63 = vmax.f32 %v1515_v44, 1.1754944e-38 }
 0x164   :  { %779 = vrcp.f32 %v501_v1 }
 0x165   :  { %v1521_v47 = vpop.xlane.xlu0 %485  ;;  %781 = vlog2.f32 %v540_v4 }
 0x166   :  { %v1523_v60 = vpop.xlane.xlu1 %310  ;;  %v542_v40 = vmax.f32 %v1521_v47, 1.1754944e-38  ;;  %v772_v5 = vpop.eup %771 }
 0x167   :  { %v515_v11 = vmul.f32 %v772_v5, %v445_v42  ;;  %v531_v55 = vmul.f32 %v772_v5, %v477_v23  ;;  %vm333_vm2 = vcmp.lt.f32.partialorder %v1523_v60, %v1519_v45 }
 0x169   :  { %v1526_v6 = vpop.xlane.xlu0 %488  ;;  %v523_v19 = vmax.f32 %v515_v11, 0.0 }
 0x16a   :  { %v1528_v27 = vpop.xlane.xlu1 %453  ;;  %v543_v59 = vmax.f32 %v1526_v6, 1.1754944e-38  ;;  %v774_v57 = vpop.eup %773 }
 0x16b   :  { %v502_v49 = vadd.f32 %v1521_v47, %v1528_v27  ;;  %v776_v30 = vpop.eup %775  ;;  %v516_v34 = vmul.f32 %v774_v57, %v448_v38  ;;  %v643_v46 = vmul.f32 %v531_v55, %v523_v19  ;;  %v532_v62 = vmul.f32 %v774_v57, %v1513_v3 }
 0x16c   :  { %v778_v18 = vpop.eup %777  ;;  %v1566_v10 = vsel %vm342_vm0, %v776_v30, 0.0  ;;  %vm1685_vm0 = vmmov %vm1682_vm4 }
 0x16d   :  { %v1531_v53 = vpop.xlane.xlu0 %491  ;;  %783 = vrcp.f32 %v502_v49  ;;  %v548_v42 = vmul.f32 0.6931472, %v778_v18  ;;  %v524_v38 = vmax.f32 %v516_v34, 0.0  ;;  %v347_v51 = vsel %vm333_vm2, %v1566_v10, 0.0 }
 0x16e   :  { %v1533_v58 = vpop.xlane.xlu1 %456  ;;  %785 = vlog2.f32 %v541_v63  ;;  %v544_v48 = vmax.f32 %v1531_v53, 1.1754944e-38  ;;  %v780_v14 = vpop.eup %779  ;;  %v651_v1 = vmul.f32 %v643_v46, %v347_v51  ;;  %vm697_vm2 = vcmask 0  }
 0x16f   :  { %v503_v56 = vadd.f32 %v1526_v6, %v1533_v58  ;;  %787 = vlog2.f32 %v542_v40  ;;  %v782_v29 = vpop.eup %781  ;;  %v517_v33 = vmul.f32 %v780_v14, %v1517_v28  ;;  %v563_v49 = vadd.f32 %v548_v42, %v1145_v13 }
 0x170   :  { %v550_v26 = vmul.f32 0.6931472, %v782_v29  ;;  %v533_v3 = vmul.f32 %v780_v14, %v1515_v44  ;;  %v644_v5 = vmul.f32 %v532_v62, %v524_v38 }
 0x171   :  { %v1540_v2 = vpop.xlane.xlu0 %494  ;;  %789 = vrcp.f32 %v503_v56  ;;  %v525_v4 = vmax.f32 %v517_v33, 0.0 }
 0x172   :  { %v1543_v20 = vpop.xlane.xlu1 %459  ;;  %v545_v22 = vmax.f32 %v1540_v2, 1.1754944e-38 }
 0x173   :  { %v504_v16 = vadd.f32 %v1531_v53, %v1543_v20  ;;  %v645_v30 = vmul.f32 %v533_v3, %v525_v4 }
 0x175   :  { %v1550_v54 = vpop.xlane.xlu0 %497  ;;  %791 = vrcp.f32 %v504_v16 }
 0x176   :  { %v1552_v61 = vpop.xlane.xlu1 %462  ;;  %793 = vlog2.f32 %v543_v59  ;;  %v546_v36 = vmax.f32 %v1550_v54, 1.1754944e-38 }
 0x177   :  { %v505_v7 = vadd.f32 %v1540_v2, %v1552_v61  ;;  %795 = vlog2.f32 %v544_v48  ;;  %v784_v0 = vpop.eup %783 }
 0x178   :  { %v786_v8 = vpop.eup %785  ;;  %v518_v60 = vmul.f32 %v784_v0, %v1528_v27  ;;  %v564_v27 = vadd.f32 %v550_v26, %v1143_v12  ;;  %v534_v12 = vmul.f32 %v784_v0, %v1521_v47 }
 0x179   :  { %v1558_v52 = vpop.xlane.xlu0 %316  ;;  %797 = vrcp.f32 %v505_v7  ;;  %v788_v9 = vpop.eup %787  ;;  %v552_v28 = vmul.f32 0.6931472, %v786_v8 }
 0x17a   :  { %v1560_v17 = vpop.xlane.xlu1 %465  ;;  %799 = vlog2.f32 %v545_v22  ;;  %v554_v63 = vmul.f32 0.6931472, %v788_v9  ;;  %v526_v11 = vmax.f32 %v518_v60, 0.0  ;;  %vm335_vm7 = vcmp.lt.f32.partialorder %v1558_v52, %v1519_v45 }
 0x17b   :  { %v506_v31 = vadd.f32 %v1550_v54, %v1560_v17  ;;  %v790_v41 = vpop.eup %789  ;;  %v565_v44 = vadd.f32 %v552_v28, %v1155_v24  ;;  %v349_v52 = vsel %vm335_vm7, %v1566_v10, 0.0 }
 0x17c   :  { %v519_v56 = vmul.f32 %v790_v41, %v1533_v58  ;;  %v646_v29 = vmul.f32 %v534_v12, %v526_v11  ;;  %v535_v47 = vmul.f32 %v790_v41, %v1526_v6  ;;  %v653_v38 = vmul.f32 %v645_v30, %v349_v52 }
 0x17d   :  { %v1564_v21 = vpop.xlane.xlu0 %623  ;;  %801 = vrcp.f32 %v506_v31 }
 0x17e   :  { %v314_v50 = vpop.xlane.xlu1 %313  ;;  %803 = vlog2.f32 %v546_v36  ;;  %v527_v19 = vmax.f32 %v519_v56, 0.0  ;;  %v660_v0 = vsub.f32 %v1564_v21, %v564_v27 }
 0x17f   :  { %v792_v15 = vpop.eup %791  ;;  %vm334_vm1 = vcmp.lt.f32.partialorder %v314_v50, %v1519_v45 }
 0x180   :  { %v794_v40 = vpop.eup %793  ;;  %v520_v48 = vmul.f32 %v792_v15, %v1543_v20  ;;  %v348_v13 = vsel %vm334_vm1, %v1566_v10, 0.0  ;;  %v566_v20 = vadd.f32 %v554_v63, %v1160_v32  ;;  %v536_v46 = vmul.f32 %v792_v15, %v1531_v53 }
 0x181   :  { %v1573_v23 = vpop.xlane.xlu0 %626  ;;  %v796_v59 = vpop.eup %795  ;;  %v556_v18 = vmul.f32 0.6931472, %v794_v40  ;;  %v652_v14 = vmul.f32 %v644_v5, %v348_v13  ;;  %v647_v26 = vmul.f32 %v535_v47, %v527_v19 }
 0x182   :  { %v621_v37 = vpop.xlane.xlu1 %620  ;;  %v558_v34 = vmul.f32 0.6931472, %v796_v59  ;;  %v528_v55 = vmax.f32 %v520_v48, 0.0  ;;  %v661_v33 = vsub.f32 %v1573_v23, %v565_v44 }
 0x183   :  { %v798_v57 = vpop.eup %797  ;;  %v659_v58 = vsub.f32 %v621_v37, %v563_v49  ;;  %v567_v42 = vadd.f32 %v556_v18, %v1164_v39  ;;  %v668_v62 = vmul.f32 %v660_v0, %v652_v14 }
 0x184   :  { %v521_v50 = vmul.f32 %v798_v57, %v1552_v61  ;;  %v800_v8 = vpop.eup %799  ;;  %v648_v6 = vmul.f32 %v536_v46, %v528_v55  ;;  %v568_v21 = vadd.f32 %v558_v34, %v1158_v25  ;;  %v537_v39 = vmul.f32 %v798_v57, %v1540_v2 }
 0x185   :  { %v630_v16 = vpop.xlane.xlu0 %629  ;;  %v667_v32 = vmul.f32 %v659_v58, %v651_v1  ;;  %v560_v36 = vmul.f32 0.6931472, %v800_v8  ;;  %v669_v1 = vmul.f32 %v661_v33, %v653_v38  ;;  %v676_v63 = vsel %vm1679_vm5, %v668_v62, 0.0 }
 0x186   :  { %v320_v7 = vpop.xlane.xlu1 %319  ;;  %v529_v41 = vmax.f32 %v521_v50, 0.0  ;;  %v662_v15 = vsub.f32 %v630_v16, %v566_v20 }
 0x187   :  { %vm336_vm3 = vcmp.lt.f32.partialorder %v320_v7, %v1519_v45  ;;  %v802_v61 = vpop.eup %801  ;;  %v675_v53 = vsel %vm1678_vm12, %v667_v32, 0.0  ;;  %v569_v27 = vadd.f32 %v560_v36, %v1168_v43 }
 0x188   :  { %v350_v24 = vsel %vm336_vm3, %v1566_v10, 0.0  ;;  %v522_v28 = vmul.f32 %v802_v61, %v1560_v17  ;;  %v804_v49 = vpop.eup %803  ;;  %v677_v56 = vadd.f32 %v676_v63, %v675_v53  ;;  %v649_v59 = vmul.f32 %v537_v39, %v529_v41 }
 0x189   :  { %v633_v22 = vpop.xlane.xlu0 %632  ;;  %v654_v51 = vmul.f32 %v646_v29, %v350_v24  ;;  %v678_v17 = vsel %vm1680_vm9, %v669_v1, 0.0  ;;  %v562_v7 = vmul.f32 0.6931472, %v804_v49  ;;  %v538_v20 = vmul.f32 %v802_v61, %v1550_v54 }
 0x18a   :  { %v323_v31 = vpop.xlane.xlu1 %322  ;;  %v663_v25 = vsub.f32 %v633_v22, %v567_v42  ;;  %v530_v2 = vmax.f32 %v522_v28, 0.0  ;;  %v679_v30 = vadd.f32 %v678_v17, %v677_v56 }
 0x18b   :  { %vm337_vm8 = vcmp.lt.f32.partialorder %v323_v31, %v1519_v45  ;;  %v670_v40 = vmul.f32 %v662_v15, %v654_v51  ;;  %v570_v29 = vadd.f32 %v562_v7, %v1162_v35 }
 0x18c   :  { %v351_v9 = vsel %vm337_vm8, %v1566_v10, 0.0  ;;  %v650_v22 = vmul.f32 %v538_v20, %v530_v2 }
 0x18d   :  { %v636_v60 = vpop.xlane.xlu0 %635  ;;  %v655_v23 = vmul.f32 %v647_v26, %v351_v9  ;;  %v680_v57 = vsel %vm1681_vm10, %v670_v40, 0.0 }
 0x18e   :  { %v326_v37 = vpop.xlane.xlu1 %325  ;;  %v664_v48 = vsub.f32 %v636_v60, %v568_v21  ;;  %v681_v52 = vadd.f32 %v680_v57, %v679_v30 }
 0x18f   :  { %vm338_vm15 = vcmp.lt.f32.partialorder %v326_v37, %v1519_v45  ;;  %v671_v11 = vmul.f32 %v663_v25, %v655_v23 }
 0x190   :  { %v352_v4 = vsel %vm338_vm15, %v1566_v10, 0.0 }
 0x191   :  { %v656_v3 = vmul.f32 %v648_v6, %v352_v4  ;;  %v639_v5 = vpop.xlane.xlu0 %638  ;;  %v682_v18 = vsel %vm1682_vm4, %v671_v11, 0.0 }
 0x192   :  { %v329_v16 = vpop.xlane.xlu1 %328  ;;  %v665_v58 = vsub.f32 %v639_v5, %v569_v27  ;;  %v683_v55 = vadd.f32 %v682_v18, %v681_v52 }
 0x193   :  { %vm339_vm6 = vcmp.lt.f32.partialorder %v329_v16, %v1519_v45  ;;  %v672_v44 = vmul.f32 %v664_v48, %v656_v3 }
 0x194   :  { %v353_v13 = vsel %vm339_vm6, %v1566_v10, 0.0 }
 0x195   :  { %v657_v12 = vmul.f32 %v649_v59, %v353_v13  ;;  %v684_v34 = vsel %vm1683_vm13, %v672_v44, 0.0 }
 0x196   :  { %v332_v43 = vpop.xlane.xlu1 %331  ;;  %v685_v54 = vadd.f32 %v684_v34, %v683_v55 }
 0x197   :  { %v673_v19 = vmul.f32 %v665_v58, %v657_v12  ;;  %vm340_vm11 = vcmp.lt.f32.partialorder %v332_v43, %v1519_v45 }
 0x198   :  { %v354_v14 = vsel %vm340_vm11, %v1566_v10, 0.0 }
 0x199   :  { %v686_v24 = vsel %vm1684_vm14, %v673_v19, 0.0  ;;  %v658_v31 = vmul.f32 %v650_v22, %v354_v14 }
 0x19a   :  { %v642_v50 = vpop.xlane.xlu1 %641  ;;  %v687_v0 = vadd.f32 %v686_v24, %v685_v54 }
 0x19b   :  { %v666_v8 = vsub.f32 %v642_v50, %v570_v29 }
 0x19d   :  { %v674_v47 = vmul.f32 %v666_v8, %v658_v31 }
 0x19f   :  { %v688_v32 = vsel %vm1685_vm0, %v674_v47, 0.0 }
 0x1a0   :  { %v689_v45 = vadd.f32 %v688_v32, %v687_v0 }
 0x1a2   :  { %v690_v46 = vrot.slane %v689_v45, 4 }
 0x1a4   :  { %v691_v33 = vadd.f32 %v690_v46, %v689_v45 }
 0x1a6   :  { %v692_v10 = vrot.slane %v691_v33, 2 }
 0x1a8   :  { %v693_v42 = vadd.f32 %v692_v10, %v691_v33 }
 0x1aa   :  { %v694_v9 = vrot.slane %v693_v42, 1 }
 0x1ac   :  { %v695_v35 = vadd.f32 %v694_v9, %v693_v42 }
 0x1ae   :  { %v696_v61 = vsub.f32 0.0, %v695_v35 }
 0x1b0   :  { %698 = vst.msk [vmem:[#allocation2] sm:$0x1] %vm697_vm2, %v696_v61 }
 0x1b1   :  { %816 = shalt.err (!%p813_p4)
}
 0x1b2   :  { %s817_s17 = scalar_lea.hbm %s1638_s2, 16 }
 0x1b3   :  { %p818_p5 = scmp.ne.s32.totalorder %s1638_s2, %s817_s17  ;;  %p821_p6 = scmp.lt.u32.totalorder %s817_s17, %s1638_s2 }
 0x1b5   :  { %p823_p7 = pnand %p821_p6, %p818_p5 }
 0x1b7   :  { %826 = shalt.err (!%p823_p7)
}
 0x1b8   :  { %708 = dma.vmem_to_hbm [thread:$0]  %s706_s12, 16, %s1638_s2, [#allocation3]  }
 0x1b9   :  { %827 = dma.done.wait [#allocation3], 16  }
 0x1ba   :  { %828 = vsyncadd [#allocation3], 4294967280 }
 0x1bb   :  { %712 = vsyncpa [#allocation3], 1 }

</bundles_post_ra>
